<compile_context>
chip_gen: v6e
topology: v6e:2x2x1
jax: 0.10.0
libtpu: 0.0.40
codegen_flags: <defaults>
</compile_context>

<pallas_src>
import functools

import jax
import jax.numpy as jnp
from jax.experimental import pallas as pl
from jax.experimental.pallas import tpu as pltpu

_LANE = 128
_SUBLANE = 8
# Cap the batch tile: double-buffered (tm, 128) f32 output ~= 1 KiB per row,
# so 2048 rows ~= 2 MiB — safe on every generation (v7x has only 64 MiB VMEM).
_TM_CAP = 2048
# Batches above this are "training sized": use an even multi-step grid so the
# parallel batch axis shards across v7x's dual TensorCores.
_SINGLE_STEP_MAX = 256


def _round_up(x, m):
    return ((x + m - 1) // m) * m


def _cdiv(a, b):
    return (a + b - 1) // b


def _qnet_kernel(x_ref, w1p_ref, w2p_ref, o_ref):
    """o = relu(x @ W1 + b1) @ W2 + b2, all matmuls accumulated in f32.

    x_ref  : (tm, In)          raw activations (no host-side augmentation)
    w1p_ref: (In+1, Hpad)      rows [0:In] = W1, row In = b1   (Hpad % 8 == 0)
    w2p_ref: (Hpad+1, OutPad)  rows [0:Hpad] = W2 (zero rows for padded hidden
                               units), row Hpad = b2; lanes >= Out are zero.
    o_ref  : (tm, OutPad)      lane-dense 128-wide output block.
    """
    in_size = w1p_ref.shape[0] - 1
    hidden = w2p_ref.shape[0] - 1          # == Hpad, multiple of 8

    # Layer 1: MXU matmul + VPU broadcast bias add (idle slots) + ReLU.
    h = jnp.dot(x_ref[...], w1p_ref[:in_size, :],
                preferred_element_type=jnp.float32)
    h = jnp.maximum(h + w1p_ref[in_size:in_size + 1, :], 0.0)

    # Layer 2: sublane-aligned static slices of the packed block (free views).
    y = jnp.dot(h.astype(w2p_ref.dtype), w2p_ref[:hidden, :],
                preferred_element_type=jnp.float32)
    y = y + w2p_ref[hidden:hidden + 1, :]  # fused bias row, lane-dense (1, 128)
    o_ref[...] = y.astype(o_ref.dtype)


def pack_params(w1, b1, w2, b2, *, param_dtype=jnp.float32):
    """Pack params into two DMA slabs (weights stored as (in, out), i.e. W.T).

    w1: (In, H)   b1: (H,) or (1, H)
    w2: (H, Out)  b2: (Out,) or (1, Out)

    Returns:
      w1p: (In+1, Hpad)      last row = b1; hidden zero-padded to a multiple
                             of 8 so in-kernel slices stay sublane-aligned.
      w2p: (Hpad+1, OutPad)  last row = b2; zero rows for padded hidden units,
                             lanes zero-padded to 128 (lane-dense output, no
                             value leakage into the padded logits).

    param_dtype=jnp.bfloat16 halves weight/activation DMA bytes on v6e/v7x
    (accumulation stays f32); default f32 keeps exactness vs the PyTorch ref.
    """
    in_size, hidden = w1.shape
    out_size = w2.shape[1]
    b1 = jnp.reshape(b1, (1, hidden)).astype(jnp.float32)
    b2 = jnp.reshape(b2, (1, out_size)).astype(jnp.float32)

    hidden_pad = _round_up(hidden, _SUBLANE)
    out_pad = _round_up(max(out_size, _LANE), _LANE)

    w1p = jnp.concatenate([w1.astype(jnp.float32), b1], axis=0)       # (In+1, H)
    w1p = jnp.pad(w1p, ((0, 0), (0, hidden_pad - hidden)))            # (In+1, Hpad)

    w2p = jnp.concatenate(
        [w2.astype(jnp.float32),
         jnp.zeros((hidden_pad - hidden, out_size), jnp.float32),
         b2], axis=0)                                                 # (Hpad+1, Out)
    w2p = jnp.pad(w2p, ((0, 0), (0, out_pad - out_size)))             # (Hpad+1, OutPad)
    return w1p.astype(param_dtype), w2p.astype(param_dtype)


def _choose_tiling(batch):
    """Pick (tm, b_pad): batch tile size and padded batch size.

    * Inference-sized batches: a single grid step (minimum fixed overhead).
    * Training-sized batches: an even number of steps so the "parallel" batch
      axis shards across v7x's 2 TensorCores (no-op on v5e/v6e), each tile
      capped at _TM_CAP rows to bound per-step VMEM on v7x.
    """
    b8 = _round_up(max(batch, 1), _SUBLANE)
    if b8 <= _SINGLE_STEP_MAX:
        return b8, b8
    n_steps = max(2, 2 * _cdiv(b8, 2 * _TM_CAP))
    tm = _round_up(_cdiv(b8, n_steps), _SUBLANE)
    return tm, tm * n_steps


def linear_qnet_forward(x, w1p, w2p, *, output_size):
    """x: (B, In), w1p: (In+1, Hpad), w2p: (Hpad+1, OutPad) -> (B, output_size)."""
    batch, in_size = x.shape
    in_aug, hidden_pad = w1p.shape
    out_pad = w2p.shape[1]
    assert in_aug == in_size + 1
    assert w2p.shape[0] == hidden_pad + 1
    assert hidden_pad % _SUBLANE == 0
    assert out_pad % _LANE == 0 and output_size <= out_pad

    tm, b_pad = _choose_tiling(batch)
    x = x.astype(w1p.dtype)                 # no-op for the default f32 path
    if b_pad != batch:
        # NOTE: padded rows still pick up the biases in the output (they are
        # sliced off below) -- never reduce over the full padded output block.
        x = jnp.pad(x, ((0, b_pad - batch), (0, 0)))

    out = pl.pallas_call(
        _qnet_kernel,
        out_shape=jax.ShapeDtypeStruct((b_pad, out_pad), jnp.float32),
        grid=(b_pad // tm,),
        in_specs=[
            # Activations stream along the batch grid axis.
            pl.BlockSpec((tm, in_size), lambda i: (i, 0)),
            # Packed weights: constant index_map -> VMEM-resident across steps.
            pl.BlockSpec((in_aug, hidden_pad), lambda i: (0, 0)),
            pl.BlockSpec((hidden_pad + 1, out_pad), lambda i: (0, 0)),
        ],
        out_specs=pl.BlockSpec((tm, out_pad), lambda i: (i, 0)),
        compiler_params=pltpu.CompilerParams(
            dimension_semantics=("parallel",)),   # 2x on v7x dual-TC
    )(x, w1p, w2p)

    # TODO(synk): for very large replay batches, fuse the immediate consumer
    # (argmax for action selection / TD-error reduction) into the kernel
    # epilogue instead of writing + re-reading the lane-padded f32 slab.
    return out[:batch, :output_size]


def init_params(key, input_size, hidden_size, output_size):
    """PyTorch nn.Linear default init (U[-1/sqrt(fan_in), +1/sqrt(fan_in)])."""
    k1, k2, k3, k4 = jax.random.split(key, 4)
    bound1 = 1.0 / (input_size ** 0.5)
    bound2 = 1.0 / (hidden_size ** 0.5)
    w1 = jax.random.uniform(k1, (input_size, hidden_size), jnp.float32, -bound1, bound1)
    b1 = jax.random.uniform(k2, (1, hidden_size), jnp.float32, -bound1, bound1)
    w2 = jax.random.uniform(k3, (hidden_size, output_size), jnp.float32, -bound2, bound2)
    b2 = jax.random.uniform(k4, (1, output_size), jnp.float32, -bound2, bound2)
    return w1, b1, w2, b2


# TODO(synk): Module.save()/load() are host-side checkpoint I/O, not kernel work.

if __name__ == "__main__":
    # Snake Q-net: 11 state features -> 32 hidden -> 3 actions.
    batch, input_size, hidden_size, output_size = 8, 11, 32, 3

    key = jax.random.PRNGKey(0)
    kx, kp, kb = jax.random.split(key, 3)
    x_small = jax.random.normal(kx, (batch, input_size), jnp.float32)
    w1, b1, w2, b2 = init_params(kp, input_size, hidden_size, output_size)
    w1p, w2p = pack_params(w1, b1, w2, b2)     # pack once, reuse every call

    fwd = jax.jit(functools.partial(linear_qnet_forward, output_size=output_size))

    def ref_fwd(xs):
        return jnp.maximum(xs @ w1 + b1, 0.0) @ w2 + b2

    # Inference-sized batch (single grid step).
    out = jax.block_until_ready(fwd(x_small, w1p, w2p))
    assert out.shape == (batch, output_size)
    assert jnp.allclose(out, ref_fwd(x_small), atol=1e-5, rtol=1e-5)

    # Replay-buffer-sized batch: exercises batch padding, the even multi-step
    # grid (v7x dual-TC sharding) and VMEM-resident weights across grid steps.
    big_batch = 1000
    x_big = jax.random.normal(kb, (big_batch, input_size), jnp.float32)
    out_big = jax.block_until_ready(fwd(x_big, w1p, w2p))
    assert out_big.shape == (big_batch, output_size)
    assert jnp.allclose(out_big, ref_fwd(x_big), atol=1e-4, rtol=1e-4)

    # Optional bf16 slabs: halve DMA bytes on v6e/v7x, f32 MXU accumulation.
    w1p_bf, w2p_bf = pack_params(w1, b1, w2, b2, param_dtype=jnp.bfloat16)
    out_bf = jax.block_until_ready(fwd(x_small, w1p_bf, w2p_bf))
    assert out_bf.shape == (batch, output_size)
    assert jnp.allclose(out_bf, ref_fwd(x_small), atol=1e-1, rtol=1e-1)

    print("KERNEL_OK")
</pallas_src>

<mosaic_0001>
module attributes {stable_mosaic.version = 11 : i64} {
  func.func @_qnet_kernel(%arg0: i32, %arg1: memref<8x11xf32, #tpu.memory_space<vmem>>, %arg2: memref<12x32xf32, #tpu.memory_space<vmem>>, %arg3: memref<33x128xf32, #tpu.memory_space<vmem>>, %arg4: memref<8x128xf32, #tpu.memory_space<vmem>>) attributes {dimension_semantics = [#tpu.dimension_semantics<parallel>], iteration_bounds = array<i64: 1>, scalar_prefetch = 0 : i64, scratch_operands = 0 : i64, tpu.core_type = #tpu.core_type<tc>, window_params = [{transform_indices = @transform_0, window_bounds = array<i64: 8, 11>}, {pipeline_mode = #tpu.pipeline_mode<synchronous>, transform_indices = @transform_1, window_bounds = array<i64: 12, 32>}, {pipeline_mode = #tpu.pipeline_mode<synchronous>, transform_indices = @transform_2, window_bounds = array<i64: 33, 128>}, {transform_indices = @transform_3, window_bounds = array<i64: 8, 128>}]} {
    %c0 = arith.constant 0 : index
    %c0_0 = arith.constant 0 : index
    %0 = vector.load %arg1[%c0, %c0_0] : memref<8x11xf32, #tpu.memory_space<vmem>>, vector<8x11xf32>
    %c0_1 = arith.constant 0 : index
    %c0_2 = arith.constant 0 : index
    %1 = vector.load %arg2[%c0_1, %c0_2] : memref<12x32xf32, #tpu.memory_space<vmem>>, vector<11x32xf32>
    %cst = arith.constant dense<0.000000e+00> : vector<8x32xf32>
    %2 = tpu.matmul %0, %1, %cst {dimension_numbers = #tpu.dot_dimension_numbers<[1], [0], [0], [1], [0, 0, 1, 1], [], []>} : vector<8x11xf32>, vector<11x32xf32>, vector<8x32xf32> -> vector<8x32xf32>
    %c11 = arith.constant 11 : index
    %c0_3 = arith.constant 0 : index
    %3 = vector.load %arg2[%c11, %c0_3] : memref<12x32xf32, #tpu.memory_space<vmem>>, vector<1x32xf32>
    %4 = vector.broadcast %3 : vector<1x32xf32> to vector<8x32xf32>
    %5 = arith.addf %2, %4 : vector<8x32xf32>
    %cst_4 = arith.constant 0.000000e+00 : f32
    %6 = vector.broadcast %cst_4 : f32 to vector<8x32xf32>
    %7 = arith.maximumf %5, %6 : vector<8x32xf32>
    %c0_5 = arith.constant 0 : index
    %c0_6 = arith.constant 0 : index
    %8 = vector.load %arg3[%c0_5, %c0_6] : memref<33x128xf32, #tpu.memory_space<vmem>>, vector<32x128xf32>
    %cst_7 = arith.constant dense<0.000000e+00> : vector<8x128xf32>
    %9 = tpu.matmul %7, %8, %cst_7 {dimension_numbers = #tpu.dot_dimension_numbers<[1], [0], [0], [1], [0, 0, 1, 1], [], []>} : vector<8x32xf32>, vector<32x128xf32>, vector<8x128xf32> -> vector<8x128xf32>
    %c32 = arith.constant 32 : index
    %c0_8 = arith.constant 0 : index
    %10 = vector.load %arg3[%c32, %c0_8] : memref<33x128xf32, #tpu.memory_space<vmem>>, vector<1x128xf32>
    %11 = vector.broadcast %10 : vector<1x128xf32> to vector<8x128xf32>
    %12 = arith.addf %9, %11 : vector<8x128xf32>
    %c0_9 = arith.constant 0 : index
    %c0_10 = arith.constant 0 : index
    %13 = vector.load %arg4[%c0_9, %c0_10] : memref<8x128xf32, #tpu.memory_space<vmem>>, vector<8x128xf32>
    tpu.vector_store %arg4[%c0_9, %c0_10], %12 {strides = array<i32>} : memref<8x128xf32, #tpu.memory_space<vmem>>, vector<8x128xf32>,
    return
  }
  func.func @transform_0(%arg0: i32) -> (i32, i32) {
    %c0_i32 = arith.constant 0 : i32
    %c0_i32_0 = arith.constant 0 : i32
    return %arg0, %c0_i32 : i32, i32
  }
  func.func @transform_1(%arg0: i32) -> (i32, i32) {
    %c0_i32 = arith.constant 0 : i32
    %c0_i32_0 = arith.constant 0 : i32
    %c0_i32_1 = arith.constant 0 : i32
    return %c0_i32, %c0_i32_0 : i32, i32
  }
  func.func @transform_2(%arg0: i32) -> (i32, i32) {
    %c0_i32 = arith.constant 0 : i32
    %c0_i32_0 = arith.constant 0 : i32
    %c0_i32_1 = arith.constant 0 : i32
    return %c0_i32, %c0_i32_0 : i32, i32
  }
  func.func @transform_3(%arg0: i32) -> (i32, i32) {
    %c0_i32 = arith.constant 0 : i32
    %c0_i32_0 = arith.constant 0 : i32
    return %arg0, %c0_i32 : i32, i32
  }
}

</mosaic_0001>

<bundles_post_ra>
// kernel: linear_qnet_forward.1
= control target key start
LH: loop header
LB: loop body
LE: loop exit
PB: predicated region body
PF: predicated region fallthrough
CT: control target
= control target key end

     0   :  { %8 = vsyncpa [#allocation3], 0  ;;  %s371_s0 = inlined_call_operand.hbm [shape: f32[8,11], index: 0, kind: input, shape index: {}]   ;;  %s372_s1 = inlined_call_operand.hbm [shape: f32[12,32], index: 1, kind: input, shape index: {}]   ;;  %s373_s2 = inlined_call_operand.hbm [shape: f32[33,128], index: 2, kind: input, shape index: {}]   ;;  %s374_s3 = inlined_call_operand.vmem [shape: f32[8,128], index: 3, kind: output, shape index: {}]  }
   0x1   :  { %9 = vsyncpa [#allocation5], 0  ;;  %s332_s12 = smov [#allocation4]  }
   0x2   :  { %s25_s13 = sshll.u32 %s332_s12, 4  ;;  %s26_s13 = int_to_ptr.vmem [resolvable:$true] %s25_s13 }
   0x3   :  { %s276_s14 = scalar_lea.vmem %s26_s13, 256  ;;  %p281_p1 = scmp.lt.s32.totalorder %s26_s13, %s26_s13 }
   0x4   :  { %p277_p0 = scmp.ne.s32.totalorder %s26_s13, %s276_s14  ;;  %p282_p2 = scmp.lt.s32.totalorder %s276_s14, %s276_s14 }
   0x6   :  { %p283_p3 = por %p282_p2, %p281_p1 }
   0x8   :  { %p284_p4 = pnand %p283_p3, %p277_p0 }
   0xa   :  { %287 = shalt.err (!%p284_p4)
}
   0xb   :  { %s333_s15 = smov 128   ;;  %s334_s16 = smov 8  }
   0xc   :  { %31 = dma.hbm_to_vmem [thread:$0]  %s372_s1, 256, %s26_s13, [#allocation5], %s333_s15, %s333_s15, %s334_s16  }
   0xd   :  { %s335_s19 = smov [#allocation2]   ;;  %s336_s21 = smov [#allocation6]  }
   0xe   :  { %s16_s20 = sshll.u32 %s335_s19, 4  ;;  %s37_s22 = sshll.u32 %s336_s21, 4  ;;  %s17_s20 = int_to_ptr.vmem [resolvable:$true] %s16_s20  ;;  %s38_s22 = int_to_ptr.vmem [resolvable:$true] %s37_s22 }
   0xf   :  { %s296_s23 = scalar_lea.vmem %s17_s20, 128  ;;  %p301_p6 = scmp.lt.s32.totalorder %s17_s20, %s17_s20 }
  0x10   :  { %p297_p5 = scmp.ne.s32.totalorder %s17_s20, %s296_s23  ;;  %p302_p7 = scmp.lt.s32.totalorder %s296_s23, %s296_s23 }
  0x12   :  { %p303_p8 = por %p302_p7, %p301_p6 }
  0x14   :  { %p304_p9 = pnand %p303_p8, %p297_p5 }
  0x16   :  { %307 = shalt.err (!%p304_p9)
}
  0x17   :  { %19 = dma.hbm_to_vmem [thread:$0]  %s371_s0, 128, %s17_s20, [#allocation3]  }
  0x18   :  { %s316_s26 = scalar_lea.vmem %s38_s22, 640  ;;  %p321_p11 = scmp.lt.s32.totalorder %s38_s22, %s38_s22 }
  0x19   :  { %p317_p10 = scmp.ne.s32.totalorder %s38_s22, %s316_s26  ;;  %p322_p12 = scmp.lt.s32.totalorder %s316_s26, %s316_s26 }
  0x1b   :  { %p323_p13 = por %p322_p12, %p321_p11 }
  0x1d   :  { %p324_p0 = pnand %p323_p13, %p317_p10 }
  0x1f   :  { %327 = shalt.err (!%p324_p0)
}
  0x20   :  { %43 = dma.hbm_to_vmem [thread:$0]  %s373_s2, 640, %s38_s22, [#allocation5], %s333_s15, %s333_s15, %s334_s16  }
  0x21   :  { %328 = dma.done.wait [#allocation3], 128  }
  0x22   :  { %329 = vsyncadd [#allocation3], 4294967168 }
  0x23   :  { %330 = dma.done.wait [#allocation5], 896  }
  0x24   :  { %331 = vsyncadd [#allocation5], 4294966400  ;;  %v337_v0 = vmov 0.0   ;;  %vm338_vm0 = vmmov 0   ;;  %vm65_vm1 = vcmask 1042432   ;;  %v54_v2 = vld [vmem:[#allocation4] sm:$0xff] }
  0x25   :  { %243 = vmatprep.subr.mxu0 %v337_v0  ;;  %247 = vmatprep.mubr.msk.f32.mxu0 %vm338_vm0, %v337_v0  ;;  %v55_v1 = vld [vmem:[#allocation4 + $0x8] sm:$0x7]  ;;  %v53_v3 = vld [vmem:[#allocation2] sm:$0xff]  ;;  %vm61_vm2 = vcmask 89088   ;;  %v142_v5 = vld [vmem:[#allocation6 + $0x10] sm:$0xff]  ;;  %vm149_vm3 = vcmask 261120  }
  0x26   :  { %250 = vmatprep.subr.mxu1 %v337_v0  ;;  %258 = vmatprep.mubr.msk.f32.mxu1 %vm338_vm0, %v337_v0  ;;  %v143_v4 = vld [vmem:[#allocation6 + $0x18] sm:$0xff]  ;;  %v141_v6 = vld [vmem:[#allocation6 + $0x8] sm:$0xff]  ;;  %v140_v7 = vld [vmem:[#allocation6] sm:$0xff] }
  0x27   :  { %244 = vmatpush3.msk.msra.mxu0 %vm65_vm1, %v55_v1  ;;  %251 = vmatpush3.msra.mxu1 %v143_v4  ;;  %v230_v8 = vld [vmem:[#allocation4 + $0xb] ss:$0 sm:$0xff]  ;;  %v233_v13 = vld [vmem:[#allocation6 + $0x20] ss:$0 sm:$0xff] }
  0x28   :  { %245 = vmatprep.subr.mxu0 %v337_v0  ;;  %252 = vmatprep.subr.mxu1 %v337_v0 }
  0x29   :  { %246 = vmatpush3.msra.mxu0 %v54_v2  ;;  %253 = vmatpush3.msra.mxu1 %v142_v5 }
  0x2a   :  { %248 = vmatmul.mubr.msk.f32.vlgmr.msra.gmra.mxu0 %vm61_vm2, %v53_v3  ;;  %254 = vmatprep.subr.mxu1 %v337_v0 }
  0x2b   :  { %255 = vmatpush3.msra.mxu1 %v141_v6 }
  0x2c   :  { %256 = vmatprep.subr.mxu1 %v337_v0 }
  0x2d   :  { %257 = vmatpush3.msra.mxu1 %v140_v7 }
  0xea   :  { %v135_v9 = vpop.f32.mrf.mxu0 }
  0xeb   :  { %v136_v10 = vadd.f32 %v230_v8, %v135_v9 }
  0xec   :  { %v249_v11 = vpop.f32.mrf.mxu0 }
  0xed   :  { %v139_v12 = vmax.f32 %v136_v10, 0.0 }
  0xef   :  { %259 = vmatmul.mubr.msk.f32.vlgmr.msra.gmra.mxu1 %vm149_vm3, %v139_v12 }
 0x1af   :  { %v219_v14 = vpop.f32.mrf.mxu1 }
 0x1b0   :  { %v220_v15 = vadd.f32 %v233_v13, %v219_v14 }
 0x1b1   :  { %v260_v16 = vpop.f32.mrf.mxu1 }
 0x1b2   :  { %223 = vst [vmem:[%s374_s3] sm:$0xff] %v220_v15 }
 0x1b3   :  { %228 = vsyncpa [#allocation3], 1 }
 0x1b4   :  { %229 = vsyncpa [#allocation5], 1 }

</bundles_post_ra>
